<compile_context>
chip_gen: v5e
topology: v5e:2x2
jax: 0.10.0
libtpu: 0.0.40
codegen_flags: <defaults>
</compile_context>

<pallas_src>
import jax
import jax.numpy as jnp
from jax.experimental import pallas as pl
from jax.experimental.pallas import tpu as pltpu

EMBED_DIM = 30
HIDDEN1 = 100
HIDDEN2 = 30
CLASS_NUM = 4
NEG_SLOPE = 0.01  # nn.LeakyReLU() default


def _leaky_relu(x):
    return jnp.where(x > 0, x, NEG_SLOPE * x)


def discriminator_kernel(text_ref, emo_ref, w1_ref, w2_ref, w3_ref, out_ref):
    """Fused single-grid-point forward.

    text_ref / emo_ref : (4B, S, D)   activations pre-stacked in torch-concat order
    w*_ref             : (in+1, out)  weight rows [0:in), bias in the last row
    out_ref            : (2, 4B, CLASS_NUM)  [0] = logits, [1] = probs
    """
    # GRL.forward is an identity (alpha only matters in the backward pass).
    # Seq-sum + concat + add collapse into one fused cross-sublane reduce.
    x = jnp.sum(text_ref[...] + emo_ref[...], axis=1)  # (4B, D)

    # TODO(synk): nn.Dropout(0.25) layers are identity at inference and are omitted here.
    h1 = jnp.dot(x, w1_ref[:EMBED_DIM, :], preferred_element_type=jnp.float32)
    h1 = _leaky_relu(h1 + w1_ref[EMBED_DIM:EMBED_DIM + 1, :])

    h2 = jnp.dot(h1, w2_ref[:HIDDEN1, :], preferred_element_type=jnp.float32)
    h2 = _leaky_relu(h2 + w2_ref[HIDDEN1:HIDDEN1 + 1, :])

    logits = jnp.dot(h2, w3_ref[:HIDDEN2, :], preferred_element_type=jnp.float32)
    logits = logits + w3_ref[HIDDEN2:HIDDEN2 + 1, :]

    # softmax over the class dim (dim=1), max-subtracted, exact reciprocal
    m = jnp.max(logits, axis=1, keepdims=True)
    e = jnp.exp(logits - m)
    probs = e * pl.reciprocal(jnp.sum(e, axis=1, keepdims=True), approx=False)

    out_ref[0, :, :] = logits
    out_ref[1, :, :] = probs


def init_params(key):
    """Deterministic init mimicking the module: xavier_normal weights, bias = -0.1.

    Weights are stored pre-transposed as (in, out) with the bias folded in as an
    extra final row -> shapes (31, 100), (101, 30), (31, 4).
    """
    def xavier_normal(k, fan_in, fan_out):
        std = jnp.sqrt(2.0 / (fan_in + fan_out))
        return std * jax.random.normal(k, (fan_in, fan_out), dtype=jnp.float32)

    def aug(w, out_dim):
        b = jnp.full((1, out_dim), -0.1, jnp.float32)
        return jnp.concatenate([w, b], axis=0)

    k1, k2, k3 = jax.random.split(key, 3)
    return {
        "w1b": aug(xavier_normal(k1, EMBED_DIM, HIDDEN1), HIDDEN1),    # (31, 100)
        "w2b": aug(xavier_normal(k2, HIDDEN1, HIDDEN2), HIDDEN2),      # (101, 30)
        "w3b": aug(xavier_normal(k3, HIDDEN2, CLASS_NUM), CLASS_NUM),  # (31, 4)
    }


def discriminator_forward(textE, emoE, textC, emoC, textEC, emoEC, textCE, emoCE,
                          alpha, params):
    # TODO(synk): GRL's -alpha gradient reversal needs a custom_vjp; forward is identity.
    del alpha
    B = textE.shape[0]

    # Stack 8 tiny inputs into two (4B, S, D) slabs OUTSIDE the kernel, in the exact
    # torch concat order (note emo order is E, C, CE, EC as in the module), so the
    # kernel issues 2 activation DMAs instead of 8 and does no in-kernel concat.
    text = jnp.concatenate([textE, textC, textEC, textCE], axis=0)
    emo = jnp.concatenate([emoE, emoC, emoCE, emoEC], axis=0)

    vmem = pl.BlockSpec(memory_space=pltpu.MemorySpace.VMEM)
    out = pl.pallas_call(
        discriminator_kernel,
        out_shape=jax.ShapeDtypeStruct((2, 4 * B, CLASS_NUM), jnp.float32),
        in_specs=[vmem] * 5,
        out_specs=vmem,
    )(text, emo, params["w1b"], params["w2b"], params["w3b"])
    return out[0], out[1]


def _reference_forward(textE, emoE, textC, emoC, textEC, emoEC, textCE, emoCE, params):
    def s(x):
        return jnp.sum(x, axis=1)

    ti = jnp.concatenate([s(textE), s(textC), s(textEC), s(textCE)], axis=0)
    em = jnp.concatenate([s(emoE), s(emoC), s(emoCE), s(emoEC)], axis=0)
    x = ti + em

    def layer(h, wb):
        return h @ wb[:-1, :] + wb[-1:, :]

    h1 = jax.nn.leaky_relu(layer(x, params["w1b"]), NEG_SLOPE)
    h2 = jax.nn.leaky_relu(layer(h1, params["w2b"]), NEG_SLOPE)
    logits = layer(h2, params["w3b"])
    probs = jax.nn.softmax(logits, axis=1)
    return logits, probs


if __name__ == "__main__":
    key = jax.random.PRNGKey(0)
    kp, *kin = jax.random.split(key, 9)
    params = init_params(kp)

    B, S = 2, 8
    shapes = (B, S, EMBED_DIM)
    textE = jax.random.normal(kin[0], shapes, jnp.float32)
    emoE = jax.random.normal(kin[1], shapes, jnp.float32)
    textC = jax.random.normal(kin[2], shapes, jnp.float32)
    emoC = jax.random.normal(kin[3], shapes, jnp.float32)
    textEC = jax.random.normal(kin[4], shapes, jnp.float32)
    emoEC = jax.random.normal(kin[5], shapes, jnp.float32)
    textCE = jax.random.normal(kin[6], shapes, jnp.float32)
    emoCE = jax.random.normal(kin[7], shapes, jnp.float32)
    alpha = 0.5

    logits, probs = discriminator_forward(
        textE, emoE, textC, emoC, textEC, emoEC, textCE, emoCE, alpha, params
    )
    jax.block_until_ready((logits, probs))

    ref_logits, ref_probs = _reference_forward(
        textE, emoE, textC, emoC, textEC, emoEC, textCE, emoCE, params
    )
    assert logits.shape == (4 * B, CLASS_NUM) and probs.shape == (4 * B, CLASS_NUM)
    assert jnp.allclose(logits, ref_logits, atol=1e-4, rtol=1e-4)
    assert jnp.allclose(probs, ref_probs, atol=1e-5, rtol=1e-4)

    print("KERNEL_OK")
</pallas_src>

<mosaic_0001>
module attributes {stable_mosaic.version = 11 : i64} {
  func.func @discriminator_kernel(%arg0: memref<8x8x30xf32, #tpu.memory_space<vmem>>, %arg1: memref<8x8x30xf32, #tpu.memory_space<vmem>>, %arg2: memref<31x100xf32, #tpu.memory_space<vmem>>, %arg3: memref<101x30xf32, #tpu.memory_space<vmem>>, %arg4: memref<31x4xf32, #tpu.memory_space<vmem>>, %arg5: memref<2x8x4xf32, #tpu.memory_space<vmem>>) attributes {dimension_semantics = [], scalar_prefetch = 0 : i64, scratch_operands = 0 : i64, tpu.core_type = #tpu.core_type<tc>} {
    %c0 = arith.constant 0 : index
    %c0_0 = arith.constant 0 : index
    %c0_1 = arith.constant 0 : index
    %0 = vector.load %arg0[%c0, %c0_0, %c0_1] : memref<8x8x30xf32, #tpu.memory_space<vmem>>, vector<8x8x30xf32>
    %c0_2 = arith.constant 0 : index
    %c0_3 = arith.constant 0 : index
    %c0_4 = arith.constant 0 : index
    %1 = vector.load %arg1[%c0_2, %c0_3, %c0_4] : memref<8x8x30xf32, #tpu.memory_space<vmem>>, vector<8x8x30xf32>
    %2 = arith.addf %0, %1 : vector<8x8x30xf32>
    %cst = arith.constant dense<0.000000e+00> : vector<8x30xf32>
    %3 = vector.multi_reduction <add>, %2, %cst [1] : vector<8x8x30xf32> to vector<8x30xf32>
    %c0_5 = arith.constant 0 : index
    %c0_6 = arith.constant 0 : index
    %4 = vector.load %arg2[%c0_5, %c0_6] : memref<31x100xf32, #tpu.memory_space<vmem>>, vector<30x100xf32>
    %cst_7 = arith.constant dense<0.000000e+00> : vector<8x100xf32>
    %5 = tpu.matmul %3, %4, %cst_7 {dimension_numbers = #tpu.dot_dimension_numbers<[1], [0], [0], [1], [0, 0, 1, 1], [], []>} : vector<8x30xf32>, vector<30x100xf32>, vector<8x100xf32> -> vector<8x100xf32>
    %c30 = arith.constant 30 : index
    %c0_8 = arith.constant 0 : index
    %6 = vector.load %arg2[%c30, %c0_8] : memref<31x100xf32, #tpu.memory_space<vmem>>, vector<1x100xf32>
    %7 = vector.broadcast %6 : vector<1x100xf32> to vector<8x100xf32>
    %8 = arith.addf %5, %7 : vector<8x100xf32>
    %cst_9 = arith.constant 0.000000e+00 : f32
    %9 = vector.broadcast %cst_9 : f32 to vector<8x100xf32>
    %10 = arith.cmpf ogt, %8, %9 : vector<8x100xf32>
    %cst_10 = arith.constant 0.00999999977 : f32
    %11 = vector.broadcast %cst_10 : f32 to vector<8x100xf32>
    %12 = arith.mulf %11, %8 : vector<8x100xf32>
    %13 = arith.select %10, %8, %12 : vector<8x100xi1>, vector<8x100xf32>
    %c0_11 = arith.constant 0 : index
    %c0_12 = arith.constant 0 : index
    %14 = vector.load %arg3[%c0_11, %c0_12] : memref<101x30xf32, #tpu.memory_space<vmem>>, vector<100x30xf32>
    %cst_13 = arith.constant dense<0.000000e+00> : vector<8x30xf32>
    %15 = tpu.matmul %13, %14, %cst_13 {dimension_numbers = #tpu.dot_dimension_numbers<[1], [0], [0], [1], [0, 0, 1, 1], [], []>} : vector<8x100xf32>, vector<100x30xf32>, vector<8x30xf32> -> vector<8x30xf32>
    %c100 = arith.constant 100 : index
    %c0_14 = arith.constant 0 : index
    %16 = vector.load %arg3[%c100, %c0_14] : memref<101x30xf32, #tpu.memory_space<vmem>>, vector<1x30xf32>
    %17 = vector.broadcast %16 : vector<1x30xf32> to vector<8x30xf32>
    %18 = arith.addf %15, %17 : vector<8x30xf32>
    %cst_15 = arith.constant 0.000000e+00 : f32
    %19 = vector.broadcast %cst_15 : f32 to vector<8x30xf32>
    %20 = arith.cmpf ogt, %18, %19 : vector<8x30xf32>
    %cst_16 = arith.constant 0.00999999977 : f32
    %21 = vector.broadcast %cst_16 : f32 to vector<8x30xf32>
    %22 = arith.mulf %21, %18 : vector<8x30xf32>
    %23 = arith.select %20, %18, %22 : vector<8x30xi1>, vector<8x30xf32>
    %c0_17 = arith.constant 0 : index
    %c0_18 = arith.constant 0 : index
    %24 = vector.load %arg4[%c0_17, %c0_18] : memref<31x4xf32, #tpu.memory_space<vmem>>, vector<30x4xf32>
    %cst_19 = arith.constant dense<0.000000e+00> : vector<8x4xf32>
    %25 = tpu.matmul %23, %24, %cst_19 {dimension_numbers = #tpu.dot_dimension_numbers<[1], [0], [0], [1], [0, 0, 1, 1], [], []>} : vector<8x30xf32>, vector<30x4xf32>, vector<8x4xf32> -> vector<8x4xf32>
    %c30_20 = arith.constant 30 : index
    %c0_21 = arith.constant 0 : index
    %26 = vector.load %arg4[%c30_20, %c0_21] : memref<31x4xf32, #tpu.memory_space<vmem>>, vector<1x4xf32>
    %27 = vector.broadcast %26 : vector<1x4xf32> to vector<8x4xf32>
    %28 = arith.addf %25, %27 : vector<8x4xf32>
    %cst_22 = arith.constant dense<0xFF800000> : vector<8xf32>
    %29 = vector.multi_reduction <maximumf>, %28, %cst_22 [1] : vector<8x4xf32> to vector<8xf32>
    %30 = vector.shape_cast %29 : vector<8xf32> to vector<8x1xf32>
    %31 = vector.broadcast %30 : vector<8x1xf32> to vector<8x4xf32>
    %32 = arith.subf %28, %31 : vector<8x4xf32>
    %33 = math.exp %32 : vector<8x4xf32>
    %cst_23 = arith.constant dense<0.000000e+00> : vector<8xf32>
    %34 = vector.multi_reduction <add>, %33, %cst_23 [1] : vector<8x4xf32> to vector<8xf32>
    %35 = vector.shape_cast %34 : vector<8xf32> to vector<8x1xf32>
    %36 = tpu.reciprocal %35 : vector<8x1xf32> -> vector<8x1xf32>
    %37 = vector.broadcast %36 : vector<8x1xf32> to vector<8x4xf32>
    %38 = arith.mulf %33, %37 : vector<8x4xf32>
    %c0_24 = arith.constant 0 : index
    %c0_25 = arith.constant 0 : index
    %c0_26 = arith.constant 0 : index
    %39 = vector.load %arg5[%c0_24, %c0_25, %c0_26] : memref<2x8x4xf32, #tpu.memory_space<vmem>>, vector<1x8x4xf32>
    %40 = vector.shape_cast %39 : vector<1x8x4xf32> to vector<8x4xf32>
    %41 = vector.shape_cast %28 : vector<8x4xf32> to vector<1x8x4xf32>
    tpu.vector_store %arg5[%c0_24, %c0_25, %c0_26], %41 {strides = array<i32>} : memref<2x8x4xf32, #tpu.memory_space<vmem>>, vector<1x8x4xf32>,
    %c1 = arith.constant 1 : index
    %c0_27 = arith.constant 0 : index
    %c0_28 = arith.constant 0 : index
    %42 = vector.load %arg5[%c1, %c0_27, %c0_28] : memref<2x8x4xf32, #tpu.memory_space<vmem>>, vector<1x8x4xf32>
    %43 = vector.shape_cast %42 : vector<1x8x4xf32> to vector<8x4xf32>
    %44 = vector.shape_cast %38 : vector<8x4xf32> to vector<1x8x4xf32>
    tpu.vector_store %arg5[%c1, %c0_27, %c0_28], %44 {strides = array<i32>} : memref<2x8x4xf32, #tpu.memory_space<vmem>>, vector<1x8x4xf32>,
    return
  }
}

</mosaic_0001>

<bundles_post_ra>
// kernel: tpu_custom_call.1
= control target key start
LH: loop header
LB: loop body
LE: loop exit
PB: predicated region body
PF: predicated region fallthrough
CT: control target
= control target key end

     0   :  { %10 = vsyncpa [#allocation3], 0  ;;  %s328_s21 = smov [#allocation2]   ;;  %s329_s23 = smov 128   ;;  %s495_s0 = inlined_call_operand.vmem [shape: f32[8,8,30], index: 0, kind: input, shape index: {}]   ;;  %s496_s1 = inlined_call_operand.vmem [shape: f32[8,8,30], index: 1, kind: input, shape index: {}]   ;;  %s497_s2 = inlined_call_operand.hbm [shape: f32[31,100], index: 2, kind: input, shape index: {}]   ;;  %s498_s3 = inlined_call_operand.vmem [shape: f32[101,30], index: 3, kind: input, shape index: {}]   ;;  %s499_s4 = inlined_call_operand.vmem [shape: f32[31,4], index: 4, kind: input, shape index: {}]   ;;  %s500_s5 = inlined_call_operand.vmem [shape: f32[2,8,4], index: 5, kind: output, shape index: {}]  }
   0x1   :  { %s19_s20 = sshll.u32 %s497_s2, 4  ;;  %s21_s22 = sshll.u32 %s328_s21, 4  ;;  %s20_s20 = int_to_ptr.hbm [resolvable:$true] %s19_s20  ;;  %s22_s22 = int_to_ptr.vmem [resolvable:$true] %s21_s22 }
   0x2   :  { %s330_s24 = smov 8  }
   0x3   :  { %27 = dma.hbm_to_vmem [thread:$0]  %s20_s20, 512, %s22_s22, [#allocation3], %s329_s23, %s329_s23, %s330_s24  }
   0x4   :  { %326 = dma.done.wait [#allocation3], 512  }
   0x5   :  { %327 = vsyncadd [#allocation3], 4294966784  ;;  %vm147_vm0 = vcmask 1045504   ;;  %v120_v0 = vld [vmem:[#allocation2 + $0x18] sm:$0x3f]  ;;  %v119_v1 = vld [vmem:[#allocation2 + $0x10] sm:$0xff] }
   0x6   :  { %285 = vmatpush.msk.msra.mxu0 %vm147_vm0, %v120_v0  ;;  %v118_v2 = vld [vmem:[#allocation2 + $0x8] sm:$0xff]  ;;  %v36_v3 = vld [vmem:[%s495_s0] sm:$0xff]  ;;  %v38_v6 = vld [vmem:[%s495_s0 + $0x10] sm:$0xff]  ;;  %vm60_vm1 = vcmask 244736   ;;  %vm193_vm2 = vcmask 1043456   ;;  %vm131_vm3 = vcmask 1041409  }
   0x7   :  { %v37_v4 = vld [vmem:[%s495_s0 + $0x8] sm:$0xff]  ;;  %v117_v5 = vld [vmem:[#allocation2] sm:$0xff]  ;;  %v39_v7 = vld [vmem:[%s495_s0 + $0x18] sm:$0xff]  ;;  %vm133_vm4 = vcmask 1042434   ;;  %vm135_vm5 = vcmask 1043459   ;;  %vm137_vm6 = vcmask 1044484  }
   0x8   :  { %v40_v8 = vld [vmem:[%s495_s0 + $0x20] sm:$0xff]  ;;  %164 = vmatpush.msra.mxu0 %v119_v1  ;;  %v41_v9 = vld [vmem:[%s495_s0 + $0x28] sm:$0xff]  ;;  %v42_v10 = vld [vmem:[%s495_s0 + $0x30] sm:$0xff]  ;;  %vm139_vm7 = vcmask 1045509   ;;  %vm141_vm8 = vcmask 1046534   ;;  %vm143_vm9 = vcmask 1047559  }
   0x9   :  { %v43_v11 = vld [vmem:[%s495_s0 + $0x38] sm:$0xff]  ;;  %v44_v12 = vld [vmem:[%s496_s1] sm:$0xff]  ;;  %v45_v13 = vld [vmem:[%s496_s1 + $0x8] sm:$0xff]  ;;  %vm189_vm11 = vcmask 818176   ;;  %vm252_vm13 = vcmask 31744  }
   0xa   :  { %v46_v14 = vld [vmem:[%s496_s1 + $0x10] sm:$0xff]  ;;  %165 = vmatpush.msra.mxu0 %v118_v2  ;;  %v47_v15 = vld [vmem:[%s496_s1 + $0x18] sm:$0xff]  ;;  %v48_v16 = vld [vmem:[%s496_s1 + $0x20] sm:$0xff]  ;;  %v52_v18 = vadd.f32 %v44_v12, %v36_v3  ;;  %v53_v19 = vadd.f32 %v45_v13, %v37_v4 }
   0xb   :  { %v49_v17 = vld [vmem:[%s496_s1 + $0x28] sm:$0xff]  ;;  %v54_v20 = vadd.f32 %v46_v14, %v38_v6  ;;  %v50_v21 = vld [vmem:[%s496_s1 + $0x30] sm:$0xff]  ;;  %v51_v22 = vld [vmem:[%s496_s1 + $0x38] sm:$0xff]  ;;  %v55_v23 = vadd.f32 %v47_v15, %v39_v7  ;;  %v56_v24 = vadd.f32 %v48_v16, %v40_v8 }
   0xc   :  { %v57_v25 = vadd.f32 %v49_v17, %v41_v9  ;;  %v186_v26 = vld [vmem:[%s498_s3 + $0x60] sm:$0xf]  ;;  %166 = vmatpush.msra.mxu0 %v117_v5  ;;  %v58_v27 = vadd.f32 %v50_v21, %v42_v10  ;;  %v59_v28 = vadd.f32 %v51_v22, %v43_v11  ;;  %v61_v29 = vsel %vm60_vm1, %v52_v18, 0.0  ;;  %v185_v31 = vld [vmem:[%s498_s3 + $0x58] sm:$0xff]  ;;  %v184_v36 = vld [vmem:[%s498_s3 + $0x50] sm:$0xff] }
   0xd   :  { %v68_v30 = vsel %vm60_vm1, %v53_v19, 0.0  ;;  %287 = vmatpush.msk.msra.mxu1 %vm193_vm2, %v186_v26  ;;  %v62_v32 = vrot.slane %v61_v29, 4  ;;  %v75_v34 = vsel %vm60_vm1, %v54_v20, 0.0  ;;  %v82_v35 = vsel %vm60_vm1, %v55_v23, 0.0  ;;  %v183_v45 = vld [vmem:[%s498_s3 + $0x48] sm:$0xff]  ;;  %v182_v54 = vld [vmem:[%s498_s3 + $0x40] sm:$0xff] }
   0xe   :  { %v69_v33 = vrot.slane %v68_v30, 4  ;;  %v76_v37 = vrot.slane %v75_v34, 4  ;;  %v83_v38 = vrot.slane %v82_v35, 4  ;;  %v89_v39 = vsel %vm60_vm1, %v56_v24, 0.0  ;;  %v181_v63 = vld [vmem:[%s498_s3 + $0x38] sm:$0xff]  ;;  %v180_v8 = vld [vmem:[%s498_s3 + $0x30] sm:$0xff] }
   0xf   :  { %v96_v40 = vsel %vm60_vm1, %v57_v25, 0.0  ;;  %201 = vmatpush.msra.mxu1 %v185_v31  ;;  %v63_v41 = vadd.f32 %v62_v32, %v61_v29  ;;  %v90_v43 = vrot.slane %v89_v39, 4  ;;  %v103_v48 = vsel %vm60_vm1, %v58_v27, 0.0  ;;  %v179_v17 = vld [vmem:[%s498_s3 + $0x28] sm:$0xff]  ;;  %v178_v25 = vld [vmem:[%s498_s3 + $0x20] sm:$0xff] }
  0x10   :  { %v70_v42 = vadd.f32 %v69_v33, %v68_v30  ;;  %v97_v44 = vrot.slane %v96_v40, 4  ;;  %v77_v46 = vadd.f32 %v76_v37, %v75_v34  ;;  %v84_v47 = vadd.f32 %v83_v38, %v82_v35  ;;  %v177_v30 = vld [vmem:[%s498_s3 + $0x18] sm:$0xff]  ;;  %v176_v37 = vld [vmem:[%s498_s3 + $0x10] sm:$0xff]  ;;  %v175_v38 = vld [vmem:[%s498_s3 + $0x8] sm:$0xff] }
  0x11   :  { %v110_v49 = vsel %vm60_vm1, %v59_v28, 0.0  ;;  %202 = vmatpush.msra.mxu1 %v184_v36  ;;  %v64_v50 = vrot.slane %v63_v41, 2  ;;  %v91_v52 = vadd.f32 %v90_v43, %v89_v39  ;;  %v104_v57 = vrot.slane %v103_v48, 4  ;;  %v174_v39 = vld [vmem:[%s498_s3] sm:$0xff] }
  0x12   :  { %v71_v51 = vrot.slane %v70_v42, 2  ;;  %v98_v53 = vadd.f32 %v97_v44, %v96_v40  ;;  %v78_v55 = vrot.slane %v77_v46, 2  ;;  %v85_v56 = vrot.slane %v84_v47, 2  ;;  %v223_v40 = vld [vmem:[%s499_s4 + $0x18] sm:$0x3f] }
  0x13   :  { %v111_v58 = vrot.slane %v110_v49, 4  ;;  %203 = vmatpush.msra.mxu1 %v183_v45  ;;  %v65_v59 = vadd.f32 %v64_v50, %v63_v41  ;;  %v92_v61 = vrot.slane %v91_v52, 2  ;;  %v105_v2 = vadd.f32 %v104_v57, %v103_v48  ;;  %289 = vmatpush.msk.msra.mxu2 %vm147_vm0, %v223_v40  ;;  %v295_v41 = vld [vmem:[#allocation2 + $0x1e] ss:$0 sm:$0xff]  ;;  %v220_v48 = vld [vmem:[%s499_s4] sm:$0xff] }
  0x14   :  { %v72_v60 = vadd.f32 %v71_v51, %v70_v42  ;;  %v99_v62 = vrot.slane %v98_v53, 2  ;;  %v79_v0 = vadd.f32 %v78_v55, %v77_v46  ;;  %v86_v1 = vadd.f32 %v85_v56, %v84_v47  ;;  %v222_v46 = vld [vmem:[%s499_s4 + $0x10] sm:$0xff]  ;;  %v221_v47 = vld [vmem:[%s499_s4 + $0x8] sm:$0xff] }
  0x15   :  { %v112_v3 = vadd.f32 %v111_v58, %v110_v49  ;;  %204 = vmatpush.msra.mxu1 %v182_v54  ;;  %v66_v4 = vrot.slane %v65_v59, 1  ;;  %v93_v6 = vadd.f32 %v92_v61, %v91_v52  ;;  %v106_v11 = vrot.slane %v105_v2, 2  ;;  %245 = vmatpush.msra.mxu2 %v222_v46  ;;  %v296_v49 = vld [vmem:[%s498_s3 + $0x64] ss:$0 sm:$0xff]  ;;  %v297_v54 = vld [vmem:[%s499_s4 + $0x1e] ss:$0 sm:$0xff] }
  0x16   :  { %v73_v5 = vrot.slane %v72_v60, 1  ;;  %v100_v7 = vadd.f32 %v99_v62, %v98_v53  ;;  %v80_v9 = vrot.slane %v79_v0, 1  ;;  %v87_v10 = vrot.slane %v86_v1, 1 }
  0x17   :  { %v113_v12 = vrot.slane %v112_v3, 2  ;;  %205 = vmatpush.msra.mxu1 %v181_v63  ;;  %v67_v13 = vadd.f32 %v66_v4, %v65_v59  ;;  %v94_v15 = vrot.slane %v93_v6, 1  ;;  %v107_v20 = vadd.f32 %v106_v11, %v105_v2  ;;  %246 = vmatpush.msra.mxu2 %v221_v47 }
  0x18   :  { %v74_v14 = vadd.f32 %v73_v5, %v72_v60  ;;  %v101_v16 = vrot.slane %v100_v7, 1  ;;  %v81_v18 = vadd.f32 %v80_v9, %v79_v0  ;;  %v88_v19 = vadd.f32 %v87_v10, %v86_v1 }
  0x19   :  { %v114_v21 = vadd.f32 %v113_v12, %v112_v3  ;;  %206 = vmatpush.msra.mxu1 %v180_v8  ;;  %v95_v22 = vadd.f32 %v94_v15, %v93_v6  ;;  %v108_v26 = vrot.slane %v107_v20, 1  ;;  %247 = vmatpush.msra.mxu2 %v220_v48 }
  0x1a   :  { %v102_v23 = vadd.f32 %v101_v16, %v100_v7  ;;  %v132_v24 = vsel %vm131_vm3, %v74_v14, %v67_v13 }
  0x1b   :  { %v115_v27 = vrot.slane %v114_v21, 1  ;;  %v134_v28 = vsel %vm133_vm4, %v81_v18, %v132_v24  ;;  %207 = vmatpush.msra.mxu1 %v179_v17  ;;  %v109_v31 = vadd.f32 %v108_v26, %v107_v20 }
  0x1c   :  { %v136_v29 = vsel %vm135_vm5, %v88_v19, %v134_v28 }
  0x1d   :  { %v116_v32 = vadd.f32 %v115_v27, %v114_v21  ;;  %v138_v33 = vsel %vm137_vm6, %v95_v22, %v136_v29  ;;  %208 = vmatpush.msra.mxu1 %v178_v25 }
  0x1e   :  { %v140_v34 = vsel %vm139_vm7, %v102_v23, %v138_v33 }
  0x1f   :  { %v142_v35 = vsel %vm141_vm8, %v109_v31, %v140_v34  ;;  %209 = vmatpush.msra.mxu1 %v177_v30 }
  0x20   :  { %v144_v36 = vsel %vm143_vm9, %v116_v32, %v142_v35 }
  0x21   :  { %286 = vmatmul.msk.f32.vlgmr.msra.gmra.mxu0 %vm60_vm1, %v144_v36  ;;  %210 = vmatpush.msra.mxu1 %v176_v37 }
  0x23   :  { %211 = vmatpush.msra.mxu1 %v175_v38 }
  0x25   :  { %212 = vmatpush.msra.mxu1 %v174_v39 }
  0x9e   :  { %v168_v42 = vpop.f32.mrf.mxu0 }
  0x9f   :  { %v169_v43 = vadd.f32 %v295_v41, %v168_v42 }
  0xa1   :  { %v172_v44 = vmul.f32 0.01, %v169_v43  ;;  %vm171_vm10 = vcmp.gt.f32.partialorder %v169_v43, 0.0 }
  0xa3   :  { %v173_v45 = vsel %vm171_vm10, %v169_v43, %v172_v44 }
  0xa4   :  { %288 = vmatmul.msk.f32.vlgmr.msra.gmra.mxu1 %vm189_vm11, %v173_v45 }
 0x121   :  { %v214_v50 = vpop.f32.mrf.mxu1 }
 0x122   :  { %v215_v51 = vadd.f32 %v296_v49, %v214_v50 }
 0x124   :  { %v218_v52 = vmul.f32 0.01, %v215_v51  ;;  %vm217_vm12 = vcmp.gt.f32.partialorder %v215_v51, 0.0 }
 0x126   :  { %v219_v53 = vsel %vm217_vm12, %v215_v51, %v218_v52 }
 0x127   :  { %290 = vmatmul.msk.f32.vlgmr.msra.gmra.mxu2 %vm60_vm1, %v219_v53 }
 0x1aa   :  { %v249_v55 = vpop.f32.mrf.mxu2 }
 0x1ab   :  { %v250_v56 = vadd.f32 %v297_v54, %v249_v55 }
 0x1ad   :  { %v253_v57 = vsel %vm252_vm13, %v250_v56, -inf  ;;  %277 = vst.msk [vmem:[%s500_s5] sm:$0xff] %vm252_vm13, %v250_v56 }
 0x1ae   :  { %254 = vmax.xlane.f32.xlu0 %v253_v57 }
 0x221   :  { %v255_v58 = vpop.xlane.xlu0 %254 }
 0x222   :  { %v256_v59 = vsub.f32 %v250_v56, %v255_v58 }
 0x224   :  { %v257_v60 = vmul.f32 1.442695, %v256_v59 }
 0x226   :  { %298 = vpow2.f32 %v257_v60 }
 0x22c   :  { %v299_v61 = vpop.eup %298 }
 0x22d   :  { %v259_v62 = vsel %vm252_vm13, %v299_v61, 0.0 }
 0x22e   :  { %260 = vadd.xlane.f32.xlu0 %v259_v62 }
 0x2a1   :  { %v261_v63 = vpop.xlane.xlu0 %260 }
 0x2a2   :  { %300 = vrcp.f32 %v261_v63  ;;  %v273_v3 = vand.u32 2147483648, %v261_v63  ;;  %v271_v5 = vand.u32 2147483647, %v261_v63  ;;  %vm267_vm15 = vweird.f32 %v261_v63 }
 0x2a4   :  { %v274_v7 = vor.u32 1.1754944e-38, %v273_v3  ;;  %vm272_vm1 = vcmp.eq.f32.partialorder %v271_v5, 8.507059e+37 }
 0x2a8   :  { %v301_v0 = vpop.eup %300 }
 0x2a9   :  { %v263_v1 = vmul.f32 %v301_v0, %v261_v63  ;;  %vm268_vm14 = vweird.f32 %v301_v0 }
 0x2aa   :  { %vm269_vm0 = vmor %vm267_vm15, %vm268_vm14 }
 0x2ab   :  { %v264_v2 = vsub.f32 1.0, %v263_v1 }
 0x2ad   :  { %v265_v4 = vmul.f32 %v301_v0, %v264_v2 }
 0x2af   :  { %v266_v6 = vadd.f32 %v301_v0, %v265_v4 }
 0x2b1   :  { %v270_v8 = vsel %vm269_vm0, %v301_v0, %v266_v6 }
 0x2b2   :  { %v275_v9 = vsel %vm272_vm1, %v274_v7, %v270_v8 }
 0x2b3   :  { %v276_v10 = vmul.f32 %v299_v61, %v275_v9 }
 0x2b5   :  { %291 = vst.msk [vmem:[%s500_s5 + $0x8] sm:$0xff] %vm252_vm13, %v276_v10 }
 0x2b6   :  { %284 = vsyncpa [#allocation3], 1 }

</bundles_post_ra>
